<compile_context>
chip_gen: v7x
topology: tpu7x:2x2x1
jax: 0.10.0
libtpu: 0.0.40
codegen_flags: <defaults>
</compile_context>

<pallas_src>
import math
import numpy as np
import jax
import jax.numpy as jnp
from jax import lax
from jax.experimental import pallas as pl
from jax.experimental.pallas import tpu as pltpu


def _round_up(x, m):
    return ((x + m - 1) // m) * m


def _pick_tile(n, cap=512):
    for cand in (512, 384, 256, 128, 64, 32, 16, 8):
        if cand <= cap and n % cand == 0:
            return cand
    return n


def _vmem_limit_bytes():
    # v5e/v6e: 128 MiB VMEM per core, v7x: 64 MiB.  Use ~3/4 of physical
    # capacity (review: <=48 MiB on v7x, 64-96 MiB on v5e/v6e).
    try:
        cap = int(pltpu.get_tpu_info().vmem_capacity_bytes)
    except Exception:
        cap = 64 * 1024 * 1024
    return max(32 * 1024 * 1024, min((cap * 3) // 4, 96 * 1024 * 1024))


def _resident_spec(block_shape, index_map):
    # Operands whose block index is constant over the WHOLE grid are fetched
    # exactly once; request a single buffer so no dead second copy is held.
    try:
        return pl.BlockSpec(block_shape, index_map, pipeline_mode=pl.Buffered(1))
    except Exception:   # older/newer API without pipeline_mode support
        return pl.BlockSpec(block_shape, index_map)


# ----------------------------------------------------------------------------
# Kernel 1: hoisted input projection
#   (M, D) @ (num_dir, D, 3Hp) + b_fused  ->  bf16 (num_dir, M, 3Hp)
# Both directions per grid step: the activation stream is read once and the
# weights stay VMEM-resident (constant index map, single buffer).
# ----------------------------------------------------------------------------
def _make_inproj_kernel(num_dir, out_dtype):
    def kernel(x_ref, w_ref, b_ref, o_ref):
        for d in range(num_dir):                       # num_dir <= 2, static
            o_ref[d] = (jnp.dot(x_ref[...], w_ref[d],
                                preferred_element_type=jnp.float32)
                        + b_ref[d]).astype(out_dtype)
    return kernel


def input_projection(x_flat, w_ih, b_in, vmem_limit):
    M, in_dim = x_flat.shape
    num_dir, _, N3 = w_ih.shape
    tm = _pick_tile(M, 256)
    return pl.pallas_call(
        _make_inproj_kernel(num_dir, jnp.bfloat16),
        out_shape=jax.ShapeDtypeStruct((num_dir, M, N3), jnp.bfloat16),
        grid_spec=pltpu.PrefetchScalarGridSpec(
            num_scalar_prefetch=0,
            grid=(M // tm,),
            in_specs=[
                pl.BlockSpec((tm, in_dim), lambda m: (m, 0)),
                _resident_spec((num_dir, in_dim, N3), lambda m: (0, 0, 0)),
                _resident_spec((num_dir, 1, N3), lambda m: (0, 0, 0)),
            ],
            out_specs=pl.BlockSpec((num_dir, tm, N3), lambda m: (0, m, 0)),
        ),
        compiler_params=pltpu.CompilerParams(
            dimension_semantics=("parallel",),
            vmem_limit_bytes=vmem_limit),
    )(x_flat, w_ih, b_in)


# ----------------------------------------------------------------------------
# Kernel 2: fused bidirectional GRU recurrence, time-tiled.
#   grid = (num_dir "parallel", T/Tt "arbitrary")
# Only h @ W_hh (bf16 MXU) and the gate nonlinearities remain in the serial
# loop.  pack_padded_sequence semantics come from an in-kernel length mask
# (hidden state frozen + outputs zeroed past each length; the reverse
# direction naturally starts at t = len-1 because masked steps keep h at 0).
# ----------------------------------------------------------------------------
def _make_bigru_kernel(Hp, Tt, num_dir, out_dtype):
    def kernel(lens_ref, xw_ref, whh_ref, bhn_ref, out_ref, h_ref):
        d = pl.program_id(0)
        tb = pl.program_id(1)
        nTb = pl.num_programs(1)

        @pl.when(tb == 0)
        def _():
            h_ref[...] = jnp.zeros_like(h_ref)

        lens = lens_ref[...]                              # (Bp, 1) int32, resident
        if num_dir == 2:
            data_tb = d * (nTb - 1 - tb) + (1 - d) * tb   # data tile for this step
        else:
            data_tb = tb
        t_base = data_tb * Tt

        def step(i, carry):
            # forward walks 0..Tt-1 inside the tile, reverse walks Tt-1..0
            if num_dir == 2:
                li = d * (Tt - 1 - i) + (1 - d) * i
            else:
                li = i
            valid = lens > (t_base + li)                  # (Bp, 1) bool
            xw = xw_ref[0, li].astype(jnp.float32)        # (Bp, 3Hp), bias folded
            h = h_ref[...]                                # (Bp, Hp) f32
            hw = jnp.dot(h.astype(jnp.bfloat16), whh_ref[d],
                         preferred_element_type=jnp.float32)   # (Bp, 3Hp)
            rz = jax.nn.sigmoid(xw[:, :2 * Hp] + hw[:, :2 * Hp])
            r = rz[:, :Hp]
            z = rz[:, Hp:]
            n = jnp.tanh(xw[:, 2 * Hp:] + r * (hw[:, 2 * Hp:] + bhn_ref[d]))
            h_new = n + z * (h - n)                       # == (1-z)*n + z*h
            h_ref[...] = jnp.where(valid, h_new, h)       # freeze past length
            out_ref[0, li] = jnp.where(valid, h_new, 0.0).astype(out_dtype)
            return carry

        lax.fori_loop(0, Tt, step, 0, unroll=True)
    return kernel


def bigru_recurrence(xw, lens_pad, w_hh, b_hn, time_tile, vmem_limit):
    num_dir, Tp, Bp, N3 = xw.shape
    Hp = w_hh.shape[1]
    Tt = time_tile
    nTb = Tp // Tt

    def tsel(d, tb):                                      # fwd: tb ; bwd: nTb-1-tb
        return d * (nTb - 1 - tb) + (1 - d) * tb

    x_map = lambda d, tb: (d, tsel(d, tb), 0, 0)

    return pl.pallas_call(
        _make_bigru_kernel(Hp, Tt, num_dir, jnp.bfloat16),
        out_shape=jax.ShapeDtypeStruct((num_dir, Tp, Bp, Hp), jnp.bfloat16),
        grid_spec=pltpu.PrefetchScalarGridSpec(
            num_scalar_prefetch=0,
            grid=(num_dir, nTb),
            in_specs=[
                _resident_spec((Bp, 1), lambda d, tb: (0, 0)),
                pl.BlockSpec((1, Tt, Bp, N3), x_map),
                _resident_spec((num_dir, Hp, N3), lambda d, tb: (0, 0, 0)),
                _resident_spec((num_dir, 1, Hp), lambda d, tb: (0, 0, 0)),
            ],
            out_specs=pl.BlockSpec((1, Tt, Bp, Hp), x_map),
            scratch_shapes=[pltpu.VMEM((Bp, Hp), jnp.float32)],
        ),
        compiler_params=pltpu.CompilerParams(
            dimension_semantics=("parallel", "arbitrary"),
            vmem_limit_bytes=vmem_limit),
    )(lens_pad, xw, w_hh, b_hn)


# ----------------------------------------------------------------------------
# Kernel 3: postproc — average directions + l2norm, with the batch-major
# transpose fused in (output written directly as (Bp, Tp, Hp)).
# ----------------------------------------------------------------------------
def _make_postproc_kernel(num_dir, no_txtnorm):
    def kernel(x_ref, o_ref):
        if num_dir == 2:
            v = (x_ref[0].astype(jnp.float32) + x_ref[1].astype(jnp.float32)) * 0.5
        else:
            v = x_ref[0].astype(jnp.float32)              # (Tt, Bt, Hp)
        if not no_txtnorm:
            # exact division for parity with torch l2norm (approx reciprocal
            # would be ~1e-3 relative error).
            norm = jnp.sqrt(jnp.sum(v * v, axis=-1, keepdims=True)) + 1e-8
            v = v / norm
        # (Tt, Bt, Hp) -> (Bt, Tt, Hp): fuse the batch-major transpose here so
        # XLA does not need a separate strided HBM pass afterwards.
        o_ref[...] = pltpu.einshape("tbh->bth", v)
    return kernel


def postproc(gru_out, no_txtnorm, time_tile, vmem_limit):
    num_dir, Tp, Bp, Hp = gru_out.shape
    Tt = time_tile
    Bt = _pick_tile(Bp, 128)
    return pl.pallas_call(
        _make_postproc_kernel(num_dir, no_txtnorm),
        out_shape=jax.ShapeDtypeStruct((Bp, Tp, Hp), jnp.float32),
        grid_spec=pltpu.PrefetchScalarGridSpec(
            num_scalar_prefetch=0,
            grid=(Tp // Tt, Bp // Bt),
            in_specs=[pl.BlockSpec((num_dir, Tt, Bt, Hp),
                                   lambda t, b: (0, t, b, 0))],
            out_specs=pl.BlockSpec((Bt, Tt, Hp), lambda t, b: (b, t, 0)),
        ),
        compiler_params=pltpu.CompilerParams(
            dimension_semantics=("parallel", "parallel"),
            vmem_limit_bytes=vmem_limit),
    )(gru_out)


# ----------------------------------------------------------------------------
# Parameter init (matches PyTorch shapes/init; gate columns fused as [r|z|n])
# ----------------------------------------------------------------------------
def init_params(key, vocab_size, word_dim, embed_size, num_layers, use_bi_gru):
    num_dir = 2 if use_bi_gru else 1
    H = embed_size
    bound = 1.0 / math.sqrt(H)          # PyTorch GRU default: U(-1/sqrt(H), 1/sqrt(H))

    key, k_emb = jax.random.split(key)
    params = {"embed": jax.random.uniform(k_emb, (vocab_size, word_dim),
                                          jnp.float32, -0.1, 0.1)}
    layers = []
    for l in range(num_layers):
        in_dim = word_dim if l == 0 else H * num_dir
        wi, wh, bi, bh = [], [], [], []
        for _ in range(num_dir):
            key, k1, k2, k3, k4 = jax.random.split(key, 5)
            w_ih = jax.random.uniform(k1, (3 * H, in_dim), jnp.float32, -bound, bound)
            w_hh = jax.random.uniform(k2, (3 * H, H), jnp.float32, -bound, bound)
            b_ih = jax.random.uniform(k3, (3 * H,), jnp.float32, -bound, bound)
            b_hh = jax.random.uniform(k4, (3 * H,), jnp.float32, -bound, bound)
            wi.append(w_ih.T)            # (in_dim, 3H), columns ordered [r | z | n]
            wh.append(w_hh.T)            # (H, 3H)
            bi.append(b_ih.reshape(1, 3 * H))
            bh.append(b_hh.reshape(1, 3 * H))
        layers.append({"w_ih": jnp.stack(wi), "w_hh": jnp.stack(wh),
                       "b_ih": jnp.stack(bi), "b_hh": jnp.stack(bh)})
    params["gru"] = layers
    return params


# ----------------------------------------------------------------------------
# Parameter packing for the kernels: pad the hidden width to a multiple of 128
# (lane-dense gate slabs), fold the r/z thirds of b_hh into the input bias
# (the n third must stay in the recurrence because of the r* multiply) and
# cast matmul operands to bf16.
# NOTE: bf16 weights / hidden matmuls drift from an fp32 PyTorch GRU; validate
# against an fp32 reference at realistic T if bit-level parity matters.
# ----------------------------------------------------------------------------
def _prepare_layer(layer, H, Hp, num_dir, first_layer):
    w_ih, w_hh = layer["w_ih"], layer["w_hh"]
    b_ih, b_hh = layer["b_ih"], layer["b_hh"]
    dH = Hp - H

    def pad_gate_cols(a):               # (..., 3H) -> (..., 3Hp), per-gate padding
        lead = a.shape[:-1]
        a = a.reshape(lead + (3, H))
        a = jnp.pad(a, [(0, 0)] * len(lead) + [(0, 0), (0, dH)])
        return a.reshape(lead + (3 * Hp,))

    b_in = jnp.concatenate([b_ih[..., :2 * H] + b_hh[..., :2 * H],
                            b_ih[..., 2 * H:]], axis=-1)        # (num_dir,1,3H)
    b_hn = b_hh[..., 2 * H:]                                    # (num_dir,1,H)

    if not first_layer:
        # rows of w_ih come from the previous layer's (padded) per-direction
        # outputs: pad each direction's H rows to Hp to match.
        w_ih = w_ih.reshape(num_dir, num_dir, H, 3 * H)
        w_ih = jnp.pad(w_ih, ((0, 0), (0, 0), (0, dH), (0, 0)))
        w_ih = w_ih.reshape(num_dir, num_dir * Hp, 3 * H)
    w_ih = pad_gate_cols(w_ih)                                  # (num_dir, in, 3Hp)
    w_hh = jnp.pad(w_hh, ((0, 0), (0, dH), (0, 0)))             # rows H -> Hp
    w_hh = pad_gate_cols(w_hh)                                  # (num_dir, Hp, 3Hp)
    b_in = pad_gate_cols(b_in)                                  # (num_dir, 1, 3Hp)
    b_hn = jnp.pad(b_hn, ((0, 0), (0, 0), (0, dH)))             # (num_dir, 1, Hp)

    return (w_ih.astype(jnp.bfloat16), w_hh.astype(jnp.bfloat16),
            b_in.astype(jnp.float32), b_hn.astype(jnp.float32))


# ----------------------------------------------------------------------------
# Forward pass equivalent to EncoderText.forward(x, lengths)
# ----------------------------------------------------------------------------
def encoder_text_forward(params, x_ids, lengths, use_bi_gru=True, no_txtnorm=False,
                         time_tile=8):
    # time_tile: 8 is safe everywhere; 16-32 pays off on v6e/v5e (128 MiB VMEM).
    lengths = np.asarray(lengths)
    B, T = x_ids.shape
    num_dir = 2 if use_bi_gru else 1
    H = params["gru"][0]["w_hh"].shape[1]
    Hp = _round_up(H, 128)                                   # lane-dense hidden width
    vmem_limit = _vmem_limit_bytes()

    # --- XLA glue: embedding gather, time-major layout, alignment padding
    emb = jnp.take(params["embed"], x_ids, axis=0)           # (B, T, D)
    x = jnp.transpose(emb, (1, 0, 2))                        # (T, B, D) time-major

    Bp = _round_up(B, 8)                                     # sublane alignment
    Tt = time_tile
    Tp = _round_up(T, Tt)
    x = jnp.pad(x, ((0, Tp - T), (0, Bp - B), (0, 0)))

    lens_pad = jnp.zeros((Bp, 1), jnp.int32).at[:B, 0].set(
        jnp.asarray(lengths, jnp.int32))                     # padded rows -> len 0

    feat = x.astype(jnp.bfloat16)
    n_layers = len(params["gru"])
    gru_out = None
    for layer_idx, layer in enumerate(params["gru"]):
        w_ih, w_hh, b_in, b_hn = _prepare_layer(layer, H, Hp, num_dir,
                                                layer_idx == 0)
        in_dim = w_ih.shape[1]
        xw = input_projection(feat.reshape(Tp * Bp, in_dim), w_ih, b_in, vmem_limit)
        xw = xw.reshape(num_dir, Tp, Bp, 3 * Hp)
        gru_out = bigru_recurrence(xw, lens_pad, w_hh, b_hn, Tt, vmem_limit)
        if layer_idx + 1 < n_layers:
            # TODO(synk): feed the two direction slabs as two operands to the
            # next input_projection (sum of two matmuls) instead of an XLA concat.
            feat = (jnp.concatenate([gru_out[0], gru_out[1]], axis=-1)
                    if num_dir == 2 else gru_out[0])

    # --- average directions + l2norm + fused batch-major transpose
    out = postproc(gru_out, no_txtnorm, Tt, vmem_limit)      # (Bp, Tp, Hp) f32
    T_out = int(lengths.max())                               # pad_packed trims to max len
    cap_emb = out[:B, :T_out, :H]
    cap_len = jnp.asarray(lengths, jnp.int32)
    return cap_emb, cap_len


# ----------------------------------------------------------------------------
if __name__ == "__main__":
    vocab_size, word_dim, embed_size, num_layers = 50, 32, 32, 1
    use_bi_gru, no_txtnorm = True, False
    B, T = 2, 8

    key = jax.random.PRNGKey(0)
    key, k_ids = jax.random.split(key)
    params = init_params(key, vocab_size, word_dim, embed_size, num_layers, use_bi_gru)

    x_ids = jax.random.randint(k_ids, (B, T), 0, vocab_size, dtype=jnp.int32)
    lengths = np.array([8, 5])       # sorted descending, max == T

    cap_emb, cap_len = encoder_text_forward(params, x_ids, lengths,
                                            use_bi_gru=use_bi_gru,
                                            no_txtnorm=no_txtnorm)
    jax.block_until_ready(cap_emb)
    jax.block_until_ready(cap_len)

    assert cap_emb.shape == (B, T, embed_size)
    assert cap_len.shape == (B,)
    assert bool(jnp.all(jnp.isfinite(cap_emb)))
    print("KERNEL_OK")
</pallas_src>

<mosaic_0001>
module attributes {stable_mosaic.version = 11 : i64} {
  func.func @kernel(%arg0: i32, %arg1: memref<64x32xbf16, #tpu.memory_space<vmem>>, %arg2: memref<2x32x384xbf16, #tpu.memory_space<vmem>>, %arg3: memref<2x1x384xf32, #tpu.memory_space<vmem>>, %arg4: memref<2x64x384xbf16, #tpu.memory_space<vmem>>) attributes {dimension_semantics = [#tpu.dimension_semantics<parallel>], iteration_bounds = array<i64: 1>, scalar_prefetch = 0 : i64, scratch_operands = 0 : i64, tpu.core_type = #tpu.core_type<tc>, window_params = [{transform_indices = @transform_0, window_bounds = array<i64: 64, 32>}, {pipeline_mode = #tpu.pipeline_mode<synchronous>, transform_indices = @transform_1, window_bounds = array<i64: 2, 32, 384>}, {pipeline_mode = #tpu.pipeline_mode<synchronous>, transform_indices = @transform_2, window_bounds = array<i64: 2, 1, 384>}, {transform_indices = @transform_3, window_bounds = array<i64: 2, 64, 384>}]} {
    %c0 = arith.constant 0 : index
    %c0_0 = arith.constant 0 : index
    %0 = vector.load %arg1[%c0, %c0_0] : memref<64x32xbf16, #tpu.memory_space<vmem>>, vector<64x32xbf16>
    %c0_1 = arith.constant 0 : index
    %c0_2 = arith.constant 0 : index
    %c0_3 = arith.constant 0 : index
    %1 = vector.load %arg2[%c0_1, %c0_2, %c0_3] : memref<2x32x384xbf16, #tpu.memory_space<vmem>>, vector<1x32x384xbf16>
    %2 = vector.shape_cast %1 : vector<1x32x384xbf16> to vector<32x384xbf16>
    %cst = arith.constant dense<0.000000e+00> : vector<64x384xf32>
    %3 = tpu.matmul %0, %2, %cst {dimension_numbers = #tpu.dot_dimension_numbers<[1], [0], [0], [1], [0, 0, 1, 1], [], []>} : vector<64x32xbf16>, vector<32x384xbf16>, vector<64x384xf32> -> vector<64x384xf32>
    %c0_4 = arith.constant 0 : index
    %c0_5 = arith.constant 0 : index
    %c0_6 = arith.constant 0 : index
    %4 = vector.load %arg3[%c0_4, %c0_5, %c0_6] : memref<2x1x384xf32, #tpu.memory_space<vmem>>, vector<1x1x384xf32>
    %5 = vector.shape_cast %4 : vector<1x1x384xf32> to vector<1x384xf32>
    %6 = vector.broadcast %5 : vector<1x384xf32> to vector<64x384xf32>
    %7 = arith.addf %3, %6 : vector<64x384xf32>
    %8 = arith.truncf %7 : vector<64x384xf32> to vector<64x384xbf16>
    %c0_7 = arith.constant 0 : index
    %c0_8 = arith.constant 0 : index
    %c0_9 = arith.constant 0 : index
    %9 = vector.load %arg4[%c0_7, %c0_8, %c0_9] : memref<2x64x384xbf16, #tpu.memory_space<vmem>>, vector<1x64x384xbf16>
    %10 = vector.shape_cast %9 : vector<1x64x384xbf16> to vector<64x384xbf16>
    %11 = vector.shape_cast %8 : vector<64x384xbf16> to vector<1x64x384xbf16>
    tpu.vector_store %arg4[%c0_7, %c0_8, %c0_9], %11 {strides = array<i32>} : memref<2x64x384xbf16, #tpu.memory_space<vmem>>, vector<1x64x384xbf16>,
    %c0_10 = arith.constant 0 : index
    %c0_11 = arith.constant 0 : index
    %12 = vector.load %arg1[%c0_10, %c0_11] : memref<64x32xbf16, #tpu.memory_space<vmem>>, vector<64x32xbf16>
    %c1 = arith.constant 1 : index
    %c0_12 = arith.constant 0 : index
    %c0_13 = arith.constant 0 : index
    %13 = vector.load %arg2[%c1, %c0_12, %c0_13] : memref<2x32x384xbf16, #tpu.memory_space<vmem>>, vector<1x32x384xbf16>
    %14 = vector.shape_cast %13 : vector<1x32x384xbf16> to vector<32x384xbf16>
    %cst_14 = arith.constant dense<0.000000e+00> : vector<64x384xf32>
    %15 = tpu.matmul %12, %14, %cst_14 {dimension_numbers = #tpu.dot_dimension_numbers<[1], [0], [0], [1], [0, 0, 1, 1], [], []>} : vector<64x32xbf16>, vector<32x384xbf16>, vector<64x384xf32> -> vector<64x384xf32>
    %c1_15 = arith.constant 1 : index
    %c0_16 = arith.constant 0 : index
    %c0_17 = arith.constant 0 : index
    %16 = vector.load %arg3[%c1_15, %c0_16, %c0_17] : memref<2x1x384xf32, #tpu.memory_space<vmem>>, vector<1x1x384xf32>
    %17 = vector.shape_cast %16 : vector<1x1x384xf32> to vector<1x384xf32>
    %18 = vector.broadcast %17 : vector<1x384xf32> to vector<64x384xf32>
    %19 = arith.addf %15, %18 : vector<64x384xf32>
    %20 = arith.truncf %19 : vector<64x384xf32> to vector<64x384xbf16>
    %c1_18 = arith.constant 1 : index
    %c0_19 = arith.constant 0 : index
    %c0_20 = arith.constant 0 : index
    %21 = vector.load %arg4[%c1_18, %c0_19, %c0_20] : memref<2x64x384xbf16, #tpu.memory_space<vmem>>, vector<1x64x384xbf16>
    %22 = vector.shape_cast %21 : vector<1x64x384xbf16> to vector<64x384xbf16>
    %23 = vector.shape_cast %20 : vector<64x384xbf16> to vector<1x64x384xbf16>
    tpu.vector_store %arg4[%c1_18, %c0_19, %c0_20], %23 {strides = array<i32>} : memref<2x64x384xbf16, #tpu.memory_space<vmem>>, vector<1x64x384xbf16>,
    return
  }
  func.func @transform_0(%arg0: i32) -> (i32, i32) {
    %c0_i32 = arith.constant 0 : i32
    %c0_i32_0 = arith.constant 0 : i32
    return %arg0, %c0_i32 : i32, i32
  }
  func.func @transform_1(%arg0: i32) -> (i32, i32, i32) {
    %c0_i32 = arith.constant 0 : i32
    %c0_i32_0 = arith.constant 0 : i32
    %c0_i32_1 = arith.constant 0 : i32
    %c0_i32_2 = arith.constant 0 : i32
    return %c0_i32, %c0_i32_0, %c0_i32_1 : i32, i32, i32
  }
  func.func @transform_2(%arg0: i32) -> (i32, i32, i32) {
    %c0_i32 = arith.constant 0 : i32
    %c0_i32_0 = arith.constant 0 : i32
    %c0_i32_1 = arith.constant 0 : i32
    %c0_i32_2 = arith.constant 0 : i32
    return %c0_i32, %c0_i32_0, %c0_i32_1 : i32, i32, i32
  }
  func.func @transform_3(%arg0: i32) -> (i32, i32, i32) {
    %c0_i32 = arith.constant 0 : i32
    %c0_i32_0 = arith.constant 0 : i32
    %c0_i32_1 = arith.constant 0 : i32
    return %c0_i32, %arg0, %c0_i32_0 : i32, i32, i32
  }
}

</mosaic_0001>

<bundles_post_ra>
// kernel: tpu_custom_call.1
= control target key start
LH: loop header
LB: loop body
LE: loop exit
PB: predicated region body
PF: predicated region fallthrough
CT: control target
= control target key end

     0   :  { %8 = vsyncpa [#allocation3], 0  ;;  %s1082_s0 = inlined_call_operand.vmem [shape: bf16[64,32], index: 0, kind: input, shape index: {}]   ;;  %s1083_s1 = inlined_call_operand.hbm [shape: bf16[2,32,384], index: 1, kind: input, shape index: {}]   ;;  %s1084_s2 = inlined_call_operand.vmem [shape: f32[2,1,384], index: 2, kind: input, shape index: {}]   ;;  %s1085_s3 = inlined_call_operand.hbm [shape: bf16[2,64,384], index: 3, kind: output, shape index: {}]  }
   0x1   :  { %9 = vsyncpa [#allocation4], 0  ;;  %s927_s12 = smov [#allocation2]   ;;  %s879_s16 = scalar_lea.hbm %s1083_s1, 1536 }
   0x2   :  { %s17_s13 = sshll.u32 %s927_s12, 4  ;;  %p880_p0 = scmp.ne.s32.totalorder %s1083_s1, %s879_s16  ;;  %s18_s13 = int_to_ptr.vmem [resolvable:$true] %s17_s13 }
   0x3   :  { %p883_p1 = scmp.lt.u32.totalorder %s879_s16, %s1083_s1 }
   0x5   :  { %p885_p2 = pnand %p883_p1, %p880_p0 }
   0x7   :  { %888 = shalt.err (!%p885_p2)
}
   0x8   :  { %s889_s21 = scalar_lea.vmem %s18_s13, 1536  ;;  %p894_p4 = scmp.lt.s32.totalorder %s18_s13, %s18_s13 }
   0x9   :  { %p890_p3 = scmp.ne.s32.totalorder %s18_s13, %s889_s21  ;;  %p895_p5 = scmp.lt.s32.totalorder %s889_s21, %s889_s21 }
   0xb   :  { %p896_p6 = por %p895_p5, %p894_p4 }
   0xd   :  { %p897_p7 = pnand %p896_p6, %p890_p3 }
   0xf   :  { %900 = shalt.err (!%p897_p7)
}
  0x10   :  { %s928_s22 = smov 192   ;;  %s929_s23 = smov 12  }
  0x11   :  { %23 = dma.hbm_to_vmem [thread:$0]  %s1083_s1, 1536, %s18_s13, [#allocation3], %s928_s22, %s928_s22, %s929_s23  }
  0x12   :  { %923 = dma.done.wait [#allocation3], 1536  }
  0x13   :  { %924 = vsyncadd [#allocation3], 4294965760  ;;  %v930_v0 = vmov 0   ;;  %v855_v1 = vld [vmem:[#allocation2 + $0x4] ss:$12 sps:$4 sm:$0xff]   ;;  %vm115_vm0 = vcmask 261120   ;;  %v48_v21 = vlaneseq }
  0x14   :  { %160 = vmatprep.mubr.bf16.mxu0 %v930_v0  ;;  %v857_v2 = vld [vmem:[#allocation2 + $0x8] ss:$12 sps:$4 sm:$0xff]   ;;  %128 = vmatprep.subr.bf16.mxu0 %v855_v1  ;;  %v858_v3 = vld [vmem:[#allocation2] ss:$12 sps:$4 sm:$0xff]   ;;  %v862_v6 = vld [vmem:[#allocation2 + $0x18] ss:$12 sps:$4 sm:$0xff]  }
  0x15   :  { %826 = vmatprep.subr.bf16.mxu1 %v857_v2  ;;  %v859_v4 = vld [vmem:[#allocation2 + $0x1c] ss:$12 sps:$4 sm:$0xff]   ;;  %129 = vmatpush1.bf16.msra.mxu0 %v858_v3  ;;  %v861_v5 = vld [vmem:[#allocation2 + $0x20] ss:$12 sps:$4 sm:$0xff]   ;;  %v868_v11 = vld [vmem:[#allocation2 + $0x38] ss:$12 sps:$4 sm:$0xff]  }
  0x16   :  { %827 = vmatpush3.bf16.msra.mxu1 %v857_v2  ;;  %130 = vmatprep.subr.bf16.mxu0 %v859_v4  ;;  %v863_v7 = vld [vmem:[%s1082_s0] sm:$0xff]   ;;  %v864_v8 = vld [vmem:[%s1082_s0 + $0x8] sm:$0xff]   ;;  %v865_v9 = vld [vmem:[#allocation2 + $0x30] ss:$12 sps:$4 sm:$0xff]   ;;  %v1007_v22 = vshrl.u32 %v48_v21, 7 }
  0x17   :  { %828 = vmatprep.subr.bf16.mxu1 %v861_v5  ;;  %830 = vmatprep.mubr.msk.bf16.mxu1 %vm115_vm0, %v863_v7  ;;  %v867_v10 = vld [vmem:[#allocation2 + $0x34] ss:$12 sps:$4 sm:$0xff]   ;;  %v873_v14 = vld [vmem:[#allocation2 + $0x4c] ss:$12 sps:$4 sm:$0xff]   ;;  %v875_v15 = vld [vmem:[#allocation2 + $0x50] ss:$12 sps:$4 sm:$0xff]  }
  0x18   :  { %v869_v12 = vld [vmem:[%s1082_s0 + $0x10] sm:$0xff]   ;;  %v870_v16 = vld [vmem:[%s1082_s0 + $0x18] sm:$0xff]   ;;  %v874_v17 = vld [vmem:[%s1082_s0] sm:$0xff]   ;;  %v50_v23 = vsub.s32 0, %v1007_v22  ;;  %v58_v24 = vsub.s32 2, %v1007_v22  ;;  %v54_v26 = vsub.s32 1, %v1007_v22 }
  0x19   :  { %131 = vmatpush1.bf16.msra.mxu0 %v862_v6  ;;  %v871_v13 = vld [vmem:[#allocation2 + $0x48] ss:$12 sps:$4 sm:$0xff]   ;;  %v878_v20 = vld [vmem:[%s1082_s0 + $0x18] sm:$0xff]   ;;  %v46_v25 = vld [vmem:[%s1084_s2] sm:$0x7] }
  0x1a   :  { %829 = vmatpush3.bf16.msra.mxu1 %v861_v5  ;;  %838 = vmatprep.subr.bf16.mxu0 %v868_v11  ;;  %v876_v18 = vld [vmem:[%s1082_s0 + $0x8] sm:$0xff]   ;;  %v877_v19 = vld [vmem:[%s1082_s0 + $0x10] sm:$0xff]   ;;  %v1015_v27 = vrot.slane %v46_v25, %v50_v23  ;;  %v59_v28 = vrot.slane %v46_v25, %v58_v24  ;;  %v1019_v29 = vrot.slane %v46_v25, %v54_v26  ;;  %v1030_v62 = vld [vmem:[%s1084_s2 + $0x3] sm:$0x7]  ;;  %s931_s2 = smov [#allocation5]  }
  0x1b   :  { %461 = vmatprep.subr.bf16.mxu1 %v867_v10  ;;  %s701_s17 = sshll.u32 %s931_s2, 4  ;;  %s702_s17 = int_to_ptr.vmem [resolvable:$true] %s701_s17 }
  0x1c   :  { %723 = vmatmul.mubr.msk.bf16.vlgmr.msra.gmra.mrb[0].mxu0 %vm115_vm0, %v863_v7  ;;  %s901_s18 = scalar_lea.vmem %s702_s17, 3072  ;;  %p906_p9 = scmp.lt.s32.totalorder %s702_s17, %s702_s17 }
  0x1d   :  { %831 = vmatmul.mubr.msk.bf16.vlgmr.msra.gmra.mrb[0].mxu1 %vm115_vm0, %v864_v8  ;;  %839 = vmatpush3.bf16.msra.mxu0 %v868_v11  ;;  %p902_p8 = scmp.ne.s32.totalorder %s702_s17, %s901_s18  ;;  %p907_p10 = scmp.lt.s32.totalorder %s901_s18, %s901_s18 }
  0x1e   :  { %462 = vmatpush1.bf16.msra.mxu1 %v865_v9  ;;  %170 = vmatprep.mubr.bf16.mxu0 %v930_v0  ;;  %v1035_v9 = vrot.slane %v1030_v62, %v50_v23 }
  0x1f   :  { %834 = vmatprep.mubr.msk.bf16.mxu1 %vm115_vm0, %v869_v12  ;;  %463 = vmatprep.subr.bf16.mxu1 %v873_v14  ;;  %p908_p11 = por %p907_p10, %p906_p9 }
  0x20   :  { %840 = vmatprep.subr.bf16.mxu0 %v875_v15 }
  0x21   :  { %841 = vmatpush3.bf16.msra.mxu0 %v875_v15  ;;  %p909_p12 = pnand %p908_p11, %p902_p8 }
  0x22   :  { %464 = vmatpush1.bf16.msra.mxu1 %v871_v13 }
  0x24   :  { %724 = vmatmul.mubr.msk.bf16.gmra.mrb[4].mxu0 %vm115_vm0, %v864_v8 }
  0x25   :  { %835 = vmatmul.mubr.msk.bf16.gmra.mrb[4].mxu1 %vm115_vm0, %v870_v16  ;;  %180 = vmatprep.mubr.bf16.mxu0 %v930_v0 }
  0x26   :  { %493 = vmatprep.mubr.bf16.mxu1 %v930_v0 }
  0x2c   :  { %725 = vmatmul.mubr.msk.bf16.gmra.mrb[8].mxu0 %vm115_vm0, %v869_v12  ;;  %v1038_v12 = vrot.slane %v1030_v62, %v54_v26 }
  0x2d   :  { %758 = vmatmul.mubr.msk.bf16.vlgmr.msra.gmra.mrb[8].mxu1 %vm115_vm0, %v874_v17  ;;  %190 = vmatprep.mubr.bf16.mxu0 %v930_v0 }
  0x2e   :  { %503 = vmatprep.mubr.bf16.mxu1 %v930_v0 }
  0x34   :  { %726 = vmatmul.mubr.msk.bf16.gmra.mrb[12].mxu0 %vm115_vm0, %v870_v16 }
  0x35   :  { %759 = vmatmul.mubr.msk.bf16.gmra.mrb[12].mxu1 %vm115_vm0, %v876_v18  ;;  %842 = vmatprep.mubr.msk.bf16.mxu0 %vm115_vm0, %v874_v17 }
  0x36   :  { %513 = vmatprep.mubr.bf16.mxu1 %v930_v0 }
  0x3c   :  { %843 = vmatmul.mubr.msk.bf16.vlgmr.msra.gmra.mrb[16].mxu0 %vm115_vm0, %v876_v18 }
  0x3d   :  { %760 = vmatmul.mubr.msk.bf16.gmra.mrb[16].mxu1 %vm115_vm0, %v877_v19  ;;  %846 = vmatprep.mubr.msk.bf16.mxu0 %vm115_vm0, %v877_v19 }
  0x3e   :  { %523 = vmatprep.mubr.bf16.mxu1 %v930_v0 }
  0x44   :  { %847 = vmatmul.mubr.msk.bf16.gmra.mrb[20].mxu0 %vm115_vm0, %v878_v20 }
  0x45   :  { %761 = vmatmul.mubr.msk.bf16.gmra.mrb[20].mxu1 %vm115_vm0, %v878_v20 }
  0xef   :  { %v162_v30 = vpop.f32.mrb[0].mxu0 }
  0xf0   :  { %v832_v31 = vpop.f32.mrb[0].mxu1  ;;  %v163_v32 = vadd.f32 %v162_v30, %v1015_v27  ;;  %v164_v34 = vpop.f32.mrb[1].mxu0 }
  0xf1   :  { %v244_v33 = vadd.f32 %v832_v31, %v59_v28  ;;  %v235_v35 = vpop.f32.mrb[1].mxu1  ;;  %v165_v36 = vadd.f32 %v164_v34, %v1019_v29  ;;  %v166_v38 = vpop.f32.mrb[2].mxu0 }
  0xf2   :  { %v236_v37 = vadd.f32 %v235_v35, %v59_v28  ;;  %v833_v39 = vpop.f32.mrb[2].mxu1  ;;  %v167_v41 = vadd.f32 %v166_v38, %v1015_v27  ;;  %v168_v43 = vpop.f32.mrb[3].mxu0 }
  0xf3   :  { %v787_v40 = vpack.c.bf16 %v244_v33, %v244_v33  ;;  %v247_v42 = vadd.f32 %v833_v39, %v59_v28  ;;  %v238_v44 = vpop.f32.mrb[3].mxu1  ;;  %v782_v45 = vpack.c.bf16 %v165_v36, %v163_v32  ;;  %v169_v47 = vadd.f32 %v168_v43, %v1019_v29 }
  0xf4   :  { %v783_v46 = vpack.c.bf16 %v236_v37, %v236_v37  ;;  %v239_v48 = vadd.f32 %v238_v44, %v59_v28 }
  0xf5   :  { %351 = vst [vmem:[#allocation5 + $0x20] sm:$0xf] %v787_v40  ;;  %v789_v49 = vpack.c.bf16 %v247_v42, %v247_v42  ;;  %346 = vst [vmem:[#allocation5] sm:$0xff] %v782_v45  ;;  %v784_v50 = vpack.c.bf16 %v169_v47, %v167_v41 }
  0xf6   :  { %347 = vst [vmem:[#allocation5 + $0x8] sm:$0xf] %v783_v46  ;;  %v785_v51 = vpack.c.bf16 %v239_v48, %v239_v48 }
  0xf7   :  { %353 = vst [vmem:[#allocation5 + $0x2c] sm:$0xf] %v789_v49  ;;  %348 = vst [vmem:[#allocation5 + $0xc] sm:$0xff] %v784_v50  ;;  %v172_v52 = vpop.f32.mrb[4].mxu0 }
  0xf8   :  { %349 = vst [vmem:[#allocation5 + $0x14] sm:$0xf] %v785_v51  ;;  %v836_v53 = vpop.f32.mrb[4].mxu1  ;;  %v173_v54 = vadd.f32 %v172_v52, %v1015_v27  ;;  %v174_v56 = vpop.f32.mrb[5].mxu0 }
  0xf9   :  { %v260_v55 = vadd.f32 %v836_v53, %v59_v28  ;;  %v251_v57 = vpop.f32.mrb[5].mxu1  ;;  %v175_v58 = vadd.f32 %v174_v56, %v1019_v29  ;;  %v176_v60 = vpop.f32.mrb[6].mxu0 }
  0xfa   :  { %v252_v59 = vadd.f32 %v251_v57, %v59_v28  ;;  %v837_v61 = vpop.f32.mrb[6].mxu1  ;;  %v177_v0 = vadd.f32 %v176_v60, %v1015_v27  ;;  %v178_v2 = vpop.f32.mrb[7].mxu0 }
  0xfb   :  { %v795_v63 = vpack.c.bf16 %v260_v55, %v260_v55  ;;  %v263_v1 = vadd.f32 %v837_v61, %v59_v28  ;;  %v254_v3 = vpop.f32.mrb[7].mxu1  ;;  %v786_v4 = vpack.c.bf16 %v175_v58, %v173_v54  ;;  %v179_v6 = vadd.f32 %v178_v2, %v1019_v29 }
  0xfc   :  { %v791_v5 = vpack.c.bf16 %v252_v59, %v252_v59  ;;  %v255_v7 = vadd.f32 %v254_v3, %v59_v28  ;;  %v393_v55 = vrot.slane %v1030_v62, %v58_v24 }
  0xfd   :  { %359 = vst [vmem:[#allocation5 + $0x50] sm:$0xf] %v795_v63  ;;  %v797_v8 = vpack.c.bf16 %v263_v1, %v263_v1  ;;  %350 = vst [vmem:[#allocation5 + $0x18] sm:$0xff] %v786_v4  ;;  %v788_v10 = vpack.c.bf16 %v179_v6, %v177_v0 }
  0xfe   :  { %355 = vst [vmem:[#allocation5 + $0x38] sm:$0xf] %v791_v5  ;;  %v793_v11 = vpack.c.bf16 %v255_v7, %v255_v7 }
  0xff   :  { %361 = vst [vmem:[#allocation5 + $0x5c] sm:$0xf] %v797_v8  ;;  %352 = vst [vmem:[#allocation5 + $0x24] sm:$0xff] %v788_v10  ;;  %v182_v13 = vpop.f32.mrb[8].mxu0 }
 0x100   :  { %357 = vst [vmem:[#allocation5 + $0x44] sm:$0xf] %v793_v11  ;;  %v495_v14 = vpop.f32.mrb[8].mxu1  ;;  %v183_v15 = vadd.f32 %v182_v13, %v1015_v27  ;;  %v184_v17 = vpop.f32.mrb[9].mxu0 }
 0x101   :  { %v496_v16 = vadd.f32 %v495_v14, %v1035_v9  ;;  %v497_v18 = vpop.f32.mrb[9].mxu1  ;;  %v185_v19 = vadd.f32 %v184_v17, %v1019_v29  ;;  %v186_v21 = vpop.f32.mrb[10].mxu0 }
 0x102   :  { %v498_v20 = vadd.f32 %v497_v18, %v1038_v12  ;;  %v499_v23 = vpop.f32.mrb[10].mxu1  ;;  %v187_v25 = vadd.f32 %v186_v21, %v1015_v27  ;;  %v188_v28 = vpop.f32.mrb[11].mxu0 }
 0x103   :  { %v500_v26 = vadd.f32 %v499_v23, %v1035_v9  ;;  %v501_v30 = vpop.f32.mrb[11].mxu1  ;;  %v790_v31 = vpack.c.bf16 %v185_v19, %v183_v15  ;;  %v189_v33 = vadd.f32 %v188_v28, %v1019_v29 }
 0x104   :  { %v798_v32 = vpack.c.bf16 %v498_v20, %v496_v16  ;;  %v502_v34 = vadd.f32 %v501_v30, %v1038_v12 }
 0x105   :  { %354 = vst [vmem:[#allocation5 + $0x30] sm:$0xff] %v790_v31  ;;  %v792_v35 = vpack.c.bf16 %v189_v33, %v187_v25 }
 0x106   :  { %680 = vst [vmem:[#allocation5 + $0x60] sm:$0xff] %v798_v32  ;;  %v800_v36 = vpack.c.bf16 %v502_v34, %v500_v26 }
 0x107   :  { %356 = vst [vmem:[#allocation5 + $0x3c] sm:$0xff] %v792_v35  ;;  %v192_v37 = vpop.f32.mrb[12].mxu0 }
 0x108   :  { %682 = vst [vmem:[#allocation5 + $0x6c] sm:$0xff] %v800_v36  ;;  %v505_v38 = vpop.f32.mrb[12].mxu1  ;;  %v193_v39 = vadd.f32 %v192_v37, %v1015_v27  ;;  %v194_v41 = vpop.f32.mrb[13].mxu0 }
 0x109   :  { %v506_v40 = vadd.f32 %v505_v38, %v1035_v9  ;;  %v507_v42 = vpop.f32.mrb[13].mxu1  ;;  %v195_v43 = vadd.f32 %v194_v41, %v1019_v29  ;;  %v196_v45 = vpop.f32.mrb[14].mxu0 }
 0x10a   :  { %v508_v44 = vadd.f32 %v507_v42, %v1038_v12  ;;  %v509_v46 = vpop.f32.mrb[14].mxu1  ;;  %v197_v47 = vadd.f32 %v196_v45, %v1015_v27  ;;  %v198_v49 = vpop.f32.mrb[15].mxu0 }
 0x10b   :  { %v510_v48 = vadd.f32 %v509_v46, %v1035_v9  ;;  %v511_v50 = vpop.f32.mrb[15].mxu1  ;;  %v794_v51 = vpack.c.bf16 %v195_v43, %v193_v39  ;;  %v199_v53 = vadd.f32 %v198_v49, %v1019_v29 }
 0x10c   :  { %v802_v52 = vpack.c.bf16 %v508_v44, %v506_v40  ;;  %v512_v54 = vadd.f32 %v511_v50, %v1038_v12 }
 0x10d   :  { %358 = vst [vmem:[#allocation5 + $0x48] sm:$0xff] %v794_v51  ;;  %v796_v56 = vpack.c.bf16 %v199_v53, %v197_v47 }
 0x10e   :  { %684 = vst [vmem:[#allocation5 + $0x78] sm:$0xff] %v802_v52  ;;  %v804_v57 = vpack.c.bf16 %v512_v54, %v510_v48 }
 0x10f   :  { %360 = vst [vmem:[#allocation5 + $0x54] sm:$0xff] %v796_v56  ;;  %v844_v58 = vpop.f32.mrb[16].mxu0 }
 0x110   :  { %686 = vst [vmem:[#allocation5 + $0x84] sm:$0xff] %v804_v57  ;;  %v515_v27 = vpop.f32.mrb[16].mxu1  ;;  %v577_v60 = vadd.f32 %v844_v58, %v393_v55  ;;  %v568_v63 = vpop.f32.mrb[17].mxu0 }
 0x111   :  { %v516_v59 = vadd.f32 %v515_v27, %v1035_v9  ;;  %v517_v61 = vpop.f32.mrb[17].mxu1  ;;  %v569_v0 = vadd.f32 %v568_v63, %v393_v55  ;;  %v845_v22 = vpop.f32.mrb[18].mxu0 }
 0x112   :  { %v518_v29 = vadd.f32 %v517_v61, %v1038_v12  ;;  %v519_v1 = vpop.f32.mrb[18].mxu1  ;;  %v803_v2 = vpack.c.bf16 %v577_v60, %v577_v60  ;;  %v580_v62 = vadd.f32 %v845_v22, %v393_v55  ;;  %v571_v4 = vpop.f32.mrb[19].mxu0 }
 0x113   :  { %v520_v24 = vadd.f32 %v519_v1, %v1035_v9  ;;  %v521_v3 = vpop.f32.mrb[19].mxu1  ;;  %v799_v6 = vpack.c.bf16 %v569_v0, %v569_v0  ;;  %v572_v8 = vadd.f32 %v571_v4, %v393_v55 }
 0x114   :  { %v806_v5 = vpack.c.bf16 %v518_v29, %v516_v59  ;;  %v522_v7 = vadd.f32 %v521_v3, %v1038_v12  ;;  %685 = vst [vmem:[#allocation5 + $0x80] sm:$0xf] %v803_v2  ;;  %v805_v10 = vpack.c.bf16 %v580_v62, %v580_v62 }
 0x115   :  { %681 = vst [vmem:[#allocation5 + $0x68] sm:$0xf] %v799_v6  ;;  %v801_v13 = vpack.c.bf16 %v572_v8, %v572_v8 }
 0x116   :  { %688 = vst [vmem:[#allocation5 + $0x90] sm:$0xff] %v806_v5  ;;  %v808_v11 = vpack.c.bf16 %v522_v7, %v520_v24  ;;  %687 = vst [vmem:[#allocation5 + $0x8c] sm:$0xf] %v805_v10 }
 0x117   :  { %683 = vst [vmem:[#allocation5 + $0x74] sm:$0xf] %v801_v13  ;;  %v848_v15 = vpop.f32.mrb[20].mxu0 }
 0x118   :  { %690 = vst [vmem:[#allocation5 + $0x9c] sm:$0xff] %v808_v11  ;;  %v525_v14 = vpop.f32.mrb[20].mxu1  ;;  %v593_v17 = vadd.f32 %v848_v15, %v393_v55  ;;  %v584_v19 = vpop.f32.mrb[21].mxu0 }
 0x119   :  { %v526_v16 = vadd.f32 %v525_v14, %v1035_v9  ;;  %v527_v18 = vpop.f32.mrb[21].mxu1  ;;  %v585_v21 = vadd.f32 %v584_v19, %v393_v55  ;;  %v849_v25 = vpop.f32.mrb[22].mxu0 }
 0x11a   :  { %v528_v20 = vadd.f32 %v527_v18, %v1038_v12  ;;  %v529_v23 = vpop.f32.mrb[22].mxu1  ;;  %v811_v26 = vpack.c.bf16 %v593_v17, %v593_v17  ;;  %v596_v30 = vadd.f32 %v849_v25, %v393_v55  ;;  %v587_v32 = vpop.f32.mrb[23].mxu0 }
 0x11b   :  { %v530_v28 = vadd.f32 %v529_v23, %v1035_v9  ;;  %v531_v31 = vpop.f32.mrb[23].mxu1  ;;  %v807_v34 = vpack.c.bf16 %v585_v21, %v585_v21  ;;  %v588_v36 = vadd.f32 %v587_v32, %v393_v55 }
 0x11c   :  { %v810_v33 = vpack.c.bf16 %v528_v20, %v526_v16  ;;  %v532_v35 = vadd.f32 %v531_v31, %v1038_v12  ;;  %693 = vst [vmem:[#allocation5 + $0xb0] sm:$0xf] %v811_v26  ;;  %v813_v37 = vpack.c.bf16 %v596_v30, %v596_v30 }
 0x11d   :  { %689 = vst [vmem:[#allocation5 + $0x98] sm:$0xf] %v807_v34  ;;  %v809_v39 = vpack.c.bf16 %v588_v36, %v588_v36 }
 0x11e   :  { %692 = vst [vmem:[#allocation5 + $0xa8] sm:$0xff] %v810_v33  ;;  %v812_v38 = vpack.c.bf16 %v532_v35, %v530_v28  ;;  %695 = vst [vmem:[#allocation5 + $0xbc] sm:$0xf] %v813_v37 }
 0x11f   :  { %691 = vst [vmem:[#allocation5 + $0xa4] sm:$0xf] %v809_v39 }
 0x120   :  { %694 = vst [vmem:[#allocation5 + $0xb4] sm:$0xff] %v812_v38 }
 0x121   :  { %912 = shalt.err (!%p909_p12)
}
 0x122   :  { %s913_s21 = scalar_lea.hbm %s1085_s3, 3072 }
 0x123   :  { %p914_p13 = scmp.ne.s32.totalorder %s1085_s3, %s913_s21  ;;  %p917_p0 = scmp.lt.u32.totalorder %s913_s21, %s1085_s3 }
 0x125   :  { %p919_p1 = pnand %p917_p0, %p914_p13 }
 0x127   :  { %922 = shalt.err (!%p919_p1)
}
 0x128   :  { %707 = dma.vmem_to_hbm [thread:$0]  %s702_s17, 3072, %s1085_s3, [#allocation4], %s928_s22, %s928_s22, %s929_s23  }
 0x129   :  { %925 = dma.done.wait [#allocation4], 3072  }
 0x12a   :  { %926 = vsyncadd [#allocation4], 4294964224 }
 0x12b   :  { %711 = vsyncpa [#allocation3], 1 }
 0x12c   :  { %712 = vsyncpa [#allocation4], 1 }

</bundles_post_ra>
